<compile_context>
chip_gen: v7x
topology: tpu7x:2x2x1
jax: 0.10.0
libtpu: 0.0.40
codegen_flags: <defaults>
</compile_context>

<pallas_src>
import jax
import jax.numpy as jnp
from jax.experimental import pallas as pl
from jax.experimental.pallas import tpu as pltpu


# ----------------------------- Pallas kernel --------------------------------


def fused_gcn_kernel(ahat_ref, x_ref, w1_ref, b1_ref, w2_ref, b2_ref, o_ref):
    """Fused 2-layer GCN:

        H = relu( (Ahat @ X) @ W1 + b1 )            # layer 1 (propagate first: F_in < hidden)
        Z = Ahat @ (H @ W2_pad) + b2_pad            # layer 2 (transform first: classes < hidden)
        O = log_softmax(Z, axis=-1)                 # padded lanes carry -1e30 -> exp ~ 0

    ahat/x/w1/w2 arrive as bf16; accumulation and the epilogue are f32.
    Dropout(p=0.5, training=False) is identity and therefore omitted.
    """
    # ---- layer 1 ----
    ax = jnp.dot(ahat_ref[...], x_ref[...], preferred_element_type=jnp.float32)
    h = jnp.dot(ax.astype(jnp.bfloat16), w1_ref[...],
                preferred_element_type=jnp.float32)
    h = jnp.maximum(h + b1_ref[...], 0.0)            # f32 bias + ReLU

    # ---- layer 2 ----
    hw = jnp.dot(h.astype(jnp.bfloat16), w2_ref[...],
                 preferred_element_type=jnp.float32)
    z = jnp.dot(ahat_ref[...], hw.astype(jnp.bfloat16),
                preferred_element_type=jnp.float32)
    z = z + b2_ref[...]                              # padded columns become ~ -1e30

    # ---- row-wise log_softmax (f32) over the lane-dense (padded) width ----
    m = jnp.max(z, axis=-1, keepdims=True)
    s = z - m
    lse = jnp.log(jnp.sum(jnp.exp(s), axis=-1, keepdims=True))
    o_ref[...] = (s - lse).astype(o_ref.dtype)


# ------------------------------ wrapper --------------------------------------


def gcn_with_label_forward(params, x, ahat):
    """params = [(W1, b1), (W2, b2)] for the 2-layer GCNwithLabel."""
    # TODO(synk): generalize to num_layers > 2 (loop of fused pairs / chained kernel).
    (w1, b1), (w2, b2) = params

    n, f_in = x.shape
    hidden = w1.shape[1]
    c = w2.shape[1]
    c_pad = ((c + 127) // 128) * 128                 # lane-dense output width (>= 128)

    # MXU inputs in bf16; bias / epilogue math stays f32.
    ahat_bf = ahat.astype(jnp.bfloat16)
    x_bf = x.astype(jnp.bfloat16)
    w1_bf = w1.astype(jnp.bfloat16)
    b1_2d = b1.reshape(1, hidden).astype(jnp.float32)

    # Pad classes to a full 128-lane width: zero weight columns contribute 0 logits,
    # -1e30 bias in the padded columns makes log_softmax ignore them.
    w2_pad = jnp.zeros((hidden, c_pad), jnp.bfloat16).at[:, :c].set(
        w2.astype(jnp.bfloat16))
    b2_pad = jnp.full((1, c_pad), -1e30, jnp.float32).at[:, :c].set(
        b2.astype(jnp.float32))

    out_padded = pl.pallas_call(
        fused_gcn_kernel,
        out_shape=jax.ShapeDtypeStruct((n, c_pad), jnp.float32),
        grid=(1,),
        in_specs=[
            pl.BlockSpec((n, n), lambda i: (0, 0)),          # Ahat (bf16)
            pl.BlockSpec((n, f_in), lambda i: (0, 0)),       # X    (bf16)
            pl.BlockSpec((f_in, hidden), lambda i: (0, 0)),  # W1   (bf16)
            pl.BlockSpec((1, hidden), lambda i: (0, 0)),     # b1   (f32)
            pl.BlockSpec((hidden, c_pad), lambda i: (0, 0)), # W2 padded (bf16)
            pl.BlockSpec((1, c_pad), lambda i: (0, 0)),      # b2 padded (f32)
        ],
        out_specs=pl.BlockSpec((n, c_pad), lambda i: (0, 0)),
        compiler_params=pltpu.CompilerParams(
            dimension_semantics=("parallel",),
            vmem_limit_bytes=32 * 1024 * 1024,
        ),
    )(ahat_bf, x_bf, w1_bf, b1_2d, w2_pad, b2_pad)

    return out_padded[:, :c]


# --------------------------- graph preprocessing ----------------------------


def build_normalized_adjacency(edge_index, num_nodes):
    """Dense  D^-1/2 (A + I_remaining) D^-1/2  matching PyG GCNConv gcn_norm
    (symmetric norm, add_remaining_self_loops, edge_weight=1).

    Self-loops are only added to nodes that do not already have one, matching
    torch_geometric's add_remaining_self_loops behavior."""
    src = edge_index[0]
    dst = edge_index[1]
    a = jnp.zeros((num_nodes, num_nodes), dtype=jnp.float32)
    # message flows source -> target: A[target, source] = 1 (duplicates accumulate, as in PyG)
    a = a.at[dst, src].add(1.0)
    diag = jnp.diagonal(a)
    a = a + jnp.diag(jnp.where(diag == 0.0, 1.0, 0.0))   # remaining self loops only
    deg = jnp.sum(a, axis=1)
    dinv = jnp.where(deg > 0, 1.0 / jnp.sqrt(deg), 0.0)
    return dinv[:, None] * a * dinv[None, :]


# ----------------------------- parameter init --------------------------------


def glorot(key, shape):
    fan_in, fan_out = shape
    limit = jnp.sqrt(6.0 / (fan_in + fan_out))
    return jax.random.uniform(
        key, shape, dtype=jnp.float32, minval=-limit, maxval=limit
    )


# --------------------------------- main --------------------------------------

if __name__ == "__main__":
    key = jax.random.PRNGKey(0)

    # dataset-implied sizes (small, synthetic)
    num_nodes = 16
    num_node_features = 8
    num_classes = 4
    hidden = 32
    num_layers = 2
    num_edges = 40

    in_dim = num_node_features + num_classes  # GCNwithLabel input dim

    k_x, k_e1, k_e2, k_w1, k_w2 = jax.random.split(key, 5)

    # node features concatenated with (soft) label channels
    x = jax.random.normal(k_x, (num_nodes, in_dim), dtype=jnp.float32)

    # random directed edges
    src = jax.random.randint(k_e1, (num_edges,), 0, num_nodes)
    dst = jax.random.randint(k_e2, (num_edges,), 0, num_nodes)
    edge_index = jnp.stack([src, dst], axis=0)  # (2, E)

    ahat = build_normalized_adjacency(edge_index, num_nodes)

    # GCNConv params: glorot weights, zero bias (PyG defaults)
    params = [
        (glorot(k_w1, (in_dim, hidden)), jnp.zeros((hidden,), jnp.float32)),
        (glorot(k_w2, (hidden, num_classes)), jnp.zeros((num_classes,), jnp.float32)),
    ]
    assert len(params) == num_layers

    out = gcn_with_label_forward(params, x, ahat)
    out = jax.block_until_ready(out)

    assert out.shape == (num_nodes, num_classes)
    # rows of log_softmax output must exp-sum to 1
    row_sums = jnp.sum(jnp.exp(out), axis=1)
    assert bool(jnp.all(jnp.abs(row_sums - 1.0) < 1e-4))

    print("KERNEL_OK")
</pallas_src>

<mosaic_0001>
module attributes {stable_mosaic.version = 11 : i64} {
  func.func @fused_gcn_kernel(%arg0: i32, %arg1: memref<16x16xbf16, #tpu.memory_space<vmem>>, %arg2: memref<16x12xbf16, #tpu.memory_space<vmem>>, %arg3: memref<12x32xbf16, #tpu.memory_space<vmem>>, %arg4: memref<1x32xf32, #tpu.memory_space<vmem>>, %arg5: memref<32x128xbf16, #tpu.memory_space<vmem>>, %arg6: memref<1x128xf32, #tpu.memory_space<vmem>>, %arg7: memref<16x128xf32, #tpu.memory_space<vmem>>) attributes {dimension_semantics = [#tpu.dimension_semantics<parallel>], iteration_bounds = array<i64: 1>, scalar_prefetch = 0 : i64, scratch_operands = 0 : i64, tpu.core_type = #tpu.core_type<tc>, window_params = [{pipeline_mode = #tpu.pipeline_mode<synchronous>, transform_indices = @transform_0, window_bounds = array<i64: 16, 16>}, {pipeline_mode = #tpu.pipeline_mode<synchronous>, transform_indices = @transform_1, window_bounds = array<i64: 16, 12>}, {pipeline_mode = #tpu.pipeline_mode<synchronous>, transform_indices = @transform_2, window_bounds = array<i64: 12, 32>}, {pipeline_mode = #tpu.pipeline_mode<synchronous>, transform_indices = @transform_3, window_bounds = array<i64: 1, 32>}, {pipeline_mode = #tpu.pipeline_mode<synchronous>, transform_indices = @transform_4, window_bounds = array<i64: 32, 128>}, {pipeline_mode = #tpu.pipeline_mode<synchronous>, transform_indices = @transform_5, window_bounds = array<i64: 1, 128>}, {pipeline_mode = #tpu.pipeline_mode<synchronous>, transform_indices = @transform_6, window_bounds = array<i64: 16, 128>}]} {
    %c0 = arith.constant 0 : index
    %c0_0 = arith.constant 0 : index
    %0 = vector.load %arg1[%c0, %c0_0] : memref<16x16xbf16, #tpu.memory_space<vmem>>, vector<16x16xbf16>
    %c0_1 = arith.constant 0 : index
    %c0_2 = arith.constant 0 : index
    %1 = vector.load %arg2[%c0_1, %c0_2] : memref<16x12xbf16, #tpu.memory_space<vmem>>, vector<16x12xbf16>
    %cst = arith.constant dense<0.000000e+00> : vector<16x12xf32>
    %2 = tpu.matmul %0, %1, %cst {dimension_numbers = #tpu.dot_dimension_numbers<[1], [0], [0], [1], [0, 0, 1, 1], [], []>} : vector<16x16xbf16>, vector<16x12xbf16>, vector<16x12xf32> -> vector<16x12xf32>
    %3 = arith.truncf %2 : vector<16x12xf32> to vector<16x12xbf16>
    %c0_3 = arith.constant 0 : index
    %c0_4 = arith.constant 0 : index
    %4 = vector.load %arg3[%c0_3, %c0_4] : memref<12x32xbf16, #tpu.memory_space<vmem>>, vector<12x32xbf16>
    %cst_5 = arith.constant dense<0.000000e+00> : vector<16x32xf32>
    %5 = tpu.matmul %3, %4, %cst_5 {dimension_numbers = #tpu.dot_dimension_numbers<[1], [0], [0], [1], [0, 0, 1, 1], [], []>} : vector<16x12xbf16>, vector<12x32xbf16>, vector<16x32xf32> -> vector<16x32xf32>
    %c0_6 = arith.constant 0 : index
    %c0_7 = arith.constant 0 : index
    %6 = vector.load %arg4[%c0_6, %c0_7] : memref<1x32xf32, #tpu.memory_space<vmem>>, vector<1x32xf32>
    %7 = vector.broadcast %6 : vector<1x32xf32> to vector<16x32xf32>
    %8 = arith.addf %5, %7 : vector<16x32xf32>
    %cst_8 = arith.constant 0.000000e+00 : f32
    %9 = vector.broadcast %cst_8 : f32 to vector<16x32xf32>
    %10 = arith.maximumf %8, %9 : vector<16x32xf32>
    %11 = arith.truncf %10 : vector<16x32xf32> to vector<16x32xbf16>
    %c0_9 = arith.constant 0 : index
    %c0_10 = arith.constant 0 : index
    %12 = vector.load %arg5[%c0_9, %c0_10] : memref<32x128xbf16, #tpu.memory_space<vmem>>, vector<32x128xbf16>
    %cst_11 = arith.constant dense<0.000000e+00> : vector<16x128xf32>
    %13 = tpu.matmul %11, %12, %cst_11 {dimension_numbers = #tpu.dot_dimension_numbers<[1], [0], [0], [1], [0, 0, 1, 1], [], []>} : vector<16x32xbf16>, vector<32x128xbf16>, vector<16x128xf32> -> vector<16x128xf32>
    %c0_12 = arith.constant 0 : index
    %c0_13 = arith.constant 0 : index
    %14 = vector.load %arg1[%c0_12, %c0_13] : memref<16x16xbf16, #tpu.memory_space<vmem>>, vector<16x16xbf16>
    %15 = arith.truncf %13 : vector<16x128xf32> to vector<16x128xbf16>
    %cst_14 = arith.constant dense<0.000000e+00> : vector<16x128xf32>
    %16 = tpu.matmul %14, %15, %cst_14 {dimension_numbers = #tpu.dot_dimension_numbers<[1], [0], [0], [1], [0, 0, 1, 1], [], []>} : vector<16x16xbf16>, vector<16x128xbf16>, vector<16x128xf32> -> vector<16x128xf32>
    %c0_15 = arith.constant 0 : index
    %c0_16 = arith.constant 0 : index
    %17 = vector.load %arg6[%c0_15, %c0_16] : memref<1x128xf32, #tpu.memory_space<vmem>>, vector<1x128xf32>
    %18 = vector.broadcast %17 : vector<1x128xf32> to vector<16x128xf32>
    %19 = arith.addf %16, %18 : vector<16x128xf32>
    %cst_17 = arith.constant dense<0xFF800000> : vector<16xf32>
    %20 = vector.multi_reduction <maximumf>, %19, %cst_17 [1] : vector<16x128xf32> to vector<16xf32>
    %21 = vector.shape_cast %20 : vector<16xf32> to vector<16x1xf32>
    %22 = vector.broadcast %21 : vector<16x1xf32> to vector<16x128xf32>
    %23 = arith.subf %19, %22 : vector<16x128xf32>
    %24 = math.exp %23 : vector<16x128xf32>
    %cst_18 = arith.constant dense<0.000000e+00> : vector<16xf32>
    %25 = vector.multi_reduction <add>, %24, %cst_18 [1] : vector<16x128xf32> to vector<16xf32>
    %26 = vector.shape_cast %25 : vector<16xf32> to vector<16x1xf32>
    %27 = math.log %26 : vector<16x1xf32>
    %28 = vector.broadcast %27 : vector<16x1xf32> to vector<16x128xf32>
    %29 = arith.subf %23, %28 : vector<16x128xf32>
    %c0_19 = arith.constant 0 : index
    %c0_20 = arith.constant 0 : index
    %30 = vector.load %arg7[%c0_19, %c0_20] : memref<16x128xf32, #tpu.memory_space<vmem>>, vector<16x128xf32>
    tpu.vector_store %arg7[%c0_19, %c0_20], %29 {strides = array<i32>} : memref<16x128xf32, #tpu.memory_space<vmem>>, vector<16x128xf32>,
    return
  }
  func.func @transform_0(%arg0: i32) -> (i32, i32) {
    %c0_i32 = arith.constant 0 : i32
    %c0_i32_0 = arith.constant 0 : i32
    %c0_i32_1 = arith.constant 0 : i32
    return %c0_i32, %c0_i32_0 : i32, i32
  }
  func.func @transform_1(%arg0: i32) -> (i32, i32) {
    %c0_i32 = arith.constant 0 : i32
    %c0_i32_0 = arith.constant 0 : i32
    %c0_i32_1 = arith.constant 0 : i32
    return %c0_i32, %c0_i32_0 : i32, i32
  }
  func.func @transform_2(%arg0: i32) -> (i32, i32) {
    %c0_i32 = arith.constant 0 : i32
    %c0_i32_0 = arith.constant 0 : i32
    %c0_i32_1 = arith.constant 0 : i32
    return %c0_i32, %c0_i32_0 : i32, i32
  }
  func.func @transform_3(%arg0: i32) -> (i32, i32) {
    %c0_i32 = arith.constant 0 : i32
    %c0_i32_0 = arith.constant 0 : i32
    %c0_i32_1 = arith.constant 0 : i32
    return %c0_i32, %c0_i32_0 : i32, i32
  }
  func.func @transform_4(%arg0: i32) -> (i32, i32) {
    %c0_i32 = arith.constant 0 : i32
    %c0_i32_0 = arith.constant 0 : i32
    %c0_i32_1 = arith.constant 0 : i32
    return %c0_i32, %c0_i32_0 : i32, i32
  }
  func.func @transform_5(%arg0: i32) -> (i32, i32) {
    %c0_i32 = arith.constant 0 : i32
    %c0_i32_0 = arith.constant 0 : i32
    %c0_i32_1 = arith.constant 0 : i32
    return %c0_i32, %c0_i32_0 : i32, i32
  }
  func.func @transform_6(%arg0: i32) -> (i32, i32) {
    %c0_i32 = arith.constant 0 : i32
    %c0_i32_0 = arith.constant 0 : i32
    %c0_i32_1 = arith.constant 0 : i32
    return %c0_i32, %c0_i32_0 : i32, i32
  }
}

</mosaic_0001>

<bundles_post_ra>
// kernel: tpu_custom_call.1
= control target key start
LH: loop header
LB: loop body
LE: loop exit
PB: predicated region body
PF: predicated region fallthrough
CT: control target
= control target key end

     0   :  { %11 = vsyncpa [#allocation3], 0  ;;  %s690_s0 = inlined_call_operand.hbm [shape: bf16[16,16], index: 0, kind: input, shape index: {}]   ;;  %s691_s1 = inlined_call_operand.hbm [shape: bf16[16,12], index: 1, kind: input, shape index: {}]   ;;  %s692_s2 = inlined_call_operand.hbm [shape: bf16[12,32], index: 2, kind: input, shape index: {}]   ;;  %s693_s3 = inlined_call_operand.vmem [shape: f32[1,32], index: 3, kind: input, shape index: {}]   ;;  %s694_s4 = inlined_call_operand.hbm [shape: bf16[32,128], index: 4, kind: input, shape index: {}]   ;;  %s695_s5 = inlined_call_operand.vmem [shape: f32[1,128], index: 5, kind: input, shape index: {}]   ;;  %s696_s6 = inlined_call_operand.hbm [shape: f32[16,128], index: 6, kind: output, shape index: {}]  }
   0x1   :  { %12 = vsyncpa [#allocation6], 0 }
   0x2   :  { %13 = vsyncpa [#allocation9], 0 }
   0x3   :  { %14 = vsyncpa [#allocation4], 0  ;;  %s546_s21 = smov [#allocation5]   ;;  %s547_s23 = smov [#allocation2]  }
   0x4   :  { %s32_s22 = sshll.u32 %s546_s21, 4  ;;  %s20_s24 = sshll.u32 %s547_s23, 4  ;;  %s33_s22 = int_to_ptr.vmem [resolvable:$true] %s32_s22  ;;  %s592_s24 = int_to_ptr.vmem [resolvable:$true] %s20_s24 }
   0x5   :  { %s428_s27 = scalar_lea.hbm %s691_s1, 128 }
   0x6   :  { %p429_p0 = scmp.ne.s32.totalorder %s691_s1, %s428_s27  ;;  %p432_p1 = scmp.lt.u32.totalorder %s428_s27, %s691_s1 }
   0x8   :  { %p434_p2 = pnand %p432_p1, %p429_p0 }
   0xa   :  { %437 = shalt.err (!%p434_p2)
}
   0xb   :  { %s438_s8 = scalar_lea.vmem %s33_s22, 128  ;;  %p443_p4 = scmp.lt.s32.totalorder %s33_s22, %s33_s22 }
   0xc   :  { %p439_p3 = scmp.ne.s32.totalorder %s33_s22, %s438_s8  ;;  %p444_p5 = scmp.lt.s32.totalorder %s438_s8, %s438_s8 }
   0xe   :  { %p445_p6 = por %p444_p5, %p443_p4 }
  0x10   :  { %p446_p7 = pnand %p445_p6, %p439_p3 }
  0x12   :  { %449 = shalt.err (!%p446_p7)
}
  0x13   :  { %s548_s9 = smov 64   ;;  %s549_s10 = smov 4  }
  0x14   :  { %38 = dma.hbm_to_vmem [thread:$0]  %s691_s1, 128, %s33_s22, [#allocation6], %s548_s9, %s548_s9, %s549_s10  }
  0x15   :  { %s450_s15 = scalar_lea.hbm %s690_s0, 128 }
  0x16   :  { %p451_p8 = scmp.ne.s32.totalorder %s690_s0, %s450_s15  ;;  %p454_p9 = scmp.lt.u32.totalorder %s450_s15, %s690_s0 }
  0x18   :  { %p456_p10 = pnand %p454_p9, %p451_p8 }
  0x1a   :  { %459 = shalt.err (!%p456_p10)
}
  0x1b   :  { %s460_s20 = scalar_lea.vmem %s592_s24, 128  ;;  %p465_p12 = scmp.lt.s32.totalorder %s592_s24, %s592_s24 }
  0x1c   :  { %p461_p11 = scmp.ne.s32.totalorder %s592_s24, %s460_s20  ;;  %p466_p13 = scmp.lt.s32.totalorder %s460_s20, %s460_s20 }
  0x1e   :  { %p467_p0 = por %p466_p13, %p465_p12 }
  0x20   :  { %p468_p1 = pnand %p467_p0, %p461_p11 }
  0x22   :  { %471 = shalt.err (!%p468_p1)
}
  0x23   :  { %26 = dma.hbm_to_vmem [thread:$0]  %s690_s0, 128, %s592_s24, [#allocation3], %s548_s9, %s548_s9, %s549_s10  }
  0x24   :  { %s550_s22 = smov [#allocation7]   ;;  %s551_s25 = smov [#allocation8]  }
  0x25   :  { %s44_s23 = sshll.u32 %s550_s22, 4  ;;  %s58_s26 = sshll.u32 %s551_s25, 4  ;;  %s45_s23 = int_to_ptr.vmem [resolvable:$true] %s44_s23  ;;  %s629_s26 = int_to_ptr.vmem [resolvable:$true] %s58_s26 }
  0x26   :  { %s472_s29 = scalar_lea.hbm %s692_s2, 128 }
  0x27   :  { %p473_p2 = scmp.ne.s32.totalorder %s692_s2, %s472_s29  ;;  %p476_p3 = scmp.lt.u32.totalorder %s472_s29, %s692_s2 }
  0x29   :  { %p478_p4 = pnand %p476_p3, %p473_p2 }
  0x2b   :  { %481 = shalt.err (!%p478_p4)
}
  0x2c   :  { %s482_s0 = scalar_lea.vmem %s45_s23, 128  ;;  %p487_p6 = scmp.lt.s32.totalorder %s45_s23, %s45_s23 }
  0x2d   :  { %p483_p5 = scmp.ne.s32.totalorder %s45_s23, %s482_s0  ;;  %p488_p7 = scmp.lt.s32.totalorder %s482_s0, %s482_s0 }
  0x2f   :  { %p489_p8 = por %p488_p7, %p487_p6 }
  0x31   :  { %p490_p9 = pnand %p489_p8, %p483_p5 }
  0x33   :  { %493 = shalt.err (!%p490_p9)
}
  0x34   :  { %50 = dma.hbm_to_vmem [thread:$0]  %s692_s2, 128, %s45_s23, [#allocation6], %s548_s9, %s548_s9, %s549_s10  }
  0x35   :  { %s494_s15 = scalar_lea.hbm %s694_s4, 256 }
  0x36   :  { %p495_p10 = scmp.ne.s32.totalorder %s694_s4, %s494_s15  ;;  %p498_p11 = scmp.lt.u32.totalorder %s494_s15, %s694_s4 }
  0x38   :  { %p500_p12 = pnand %p498_p11, %p495_p10 }
  0x3a   :  { %503 = shalt.err (!%p500_p12)
}
  0x3b   :  { %s504_s20 = scalar_lea.vmem %s629_s26, 256  ;;  %p509_p0 = scmp.lt.s32.totalorder %s629_s26, %s629_s26 }
  0x3c   :  { %p505_p13 = scmp.ne.s32.totalorder %s629_s26, %s504_s20  ;;  %p510_p1 = scmp.lt.s32.totalorder %s504_s20, %s504_s20 }
  0x3e   :  { %p511_p2 = por %p510_p1, %p509_p0 }
  0x40   :  { %p512_p3 = pnand %p511_p2, %p505_p13 }
  0x42   :  { %515 = shalt.err (!%p512_p3)
}
  0x43   :  { %64 = dma.hbm_to_vmem [thread:$0]  %s694_s4, 256, %s629_s26, [#allocation9], %s548_s9, %s548_s9, %s549_s10  }
  0x44   :  { %538 = dma.done.wait [#allocation3], 128  }
  0x45   :  { %539 = vsyncadd [#allocation3], 4294967168 }
  0x46   :  { %540 = dma.done.wait [#allocation6], 256  }
  0x47   :  { %541 = vsyncadd [#allocation6], 4294967040 }
  0x48   :  { %542 = dma.done.wait [#allocation9], 256  }
  0x49   :  { %543 = vsyncadd [#allocation9], 4294967040  ;;  %v552_v0 = vmov 0.0   ;;  %vm553_vm0 = vmmov 0   ;;  %v415_v1 = vld [vmem:[#allocation5] sm:$0xff]   ;;  %v416_v2 = vld [vmem:[#allocation2] sm:$0xff]  }
  0x4a   :  { %378 = vmatprep.subr.bf16.mxu0 %v552_v0  ;;  %380 = vmatprep.mubr.msk.bf16.mxu0 %vm553_vm0, %v552_v0  ;;  %vm95_vm1 = vcmask 130048   ;;  %v417_v3 = vld [vmem:[#allocation7] sm:$0x3f]   ;;  %vm159_vm2 = vcmask 1045504   ;;  %vm155_vm3 = vcmask 97280   ;;  %v418_v10 = vld [vmem:[#allocation8] sm:$0xff]  }
  0x4b   :  { %384 = vmatprep.subr.bf16.mxu1 %v552_v0  ;;  %386 = vmatprep.mubr.msk.bf16.mxu1 %vm553_vm0, %v552_v0  ;;  %v161_v4 = vsel %vm159_vm2, %v417_v3, 0  ;;  %v419_v11 = vld [vmem:[#allocation8 + $0x8] sm:$0xff]   ;;  %vm223_vm4 = vcmask 261120  }
  0x4c   :  { %379 = vmatpush3.bf16.msra.mxu0 %v415_v1  ;;  %385 = vmatpush3.bf16.msra.mxu1 %v161_v4  ;;  %v361_v12 = vld [vmem:[%s693_s3] ss:$0 sm:$0xff] }
  0x4d   :  { %390 = vmatprep.subr.bf16.mxu0 %v552_v0  ;;  %398 = vmatprep.subr.bf16.mxu1 %v552_v0  ;;  %v367_v27 = vld [vmem:[%s695_s5] ss:$0 sm:$0xff]  ;;  %s554_s5 = smov [#allocation10]  }
  0x4e   :  { %s344_s21 = sshll.u32 %s554_s5, 4  ;;  %s345_s21 = int_to_ptr.vmem [resolvable:$true] %s344_s21 }
  0x4f   :  { %381 = vmatmul.mubr.msk.bf16.vlgmr.msra.gmra.mrb[0].mxu0 %vm95_vm1, %v416_v2  ;;  %s516_s22 = scalar_lea.vmem %s345_s21, 256  ;;  %p521_p5 = scmp.lt.s32.totalorder %s345_s21, %s345_s21 }
  0x50   :  { %394 = vmatprep.mubr.msk.bf16.mxu0 %vm553_vm0, %v552_v0  ;;  %391 = vmatpush3.bf16.msra.mxu0 %v418_v10  ;;  %p517_p4 = scmp.ne.s32.totalorder %s345_s21, %s516_s22  ;;  %p522_p6 = scmp.lt.s32.totalorder %s516_s22, %s516_s22 }
  0x51   :  { %392 = vmatprep.subr.bf16.mxu0 %v552_v0 }
  0x52   :  { %p523_p7 = por %p522_p6, %p521_p5 }
  0x54   :  { %393 = vmatpush3.bf16.msra.mxu0 %v419_v11  ;;  %p524_p8 = pnand %p523_p7, %p517_p4 }
 0x122   :  { %v133_v5 = vpop.f32.mrb[0].mxu0 }
 0x123   :  { %v382_v6 = vpop.f32.mrb[1].mxu0 }
 0x124   :  { %v136_v7 = vpop.f32.mrb[2].mxu0 }
 0x125   :  { %v140_v8 = vpack.c.bf16 %v136_v7, %v133_v5  ;;  %v383_v9 = vpop.f32.mrb[3].mxu0 }
 0x127   :  { %387 = vmatmul.mubr.msk.bf16.vlgmr.msra.gmra.mrb[0].mxu1 %vm155_vm3, %v140_v8 }
 0x128   :  { %400 = vmatprep.mubr.msk.bf16.mxu1 %vm553_vm0, %v552_v0 }
 0x1fa   :  { %v197_v13 = vpop.f32.mrb[0].mxu1 }
 0x1fb   :  { %v198_v14 = vadd.f32 %v361_v12, %v197_v13  ;;  %v388_v15 = vpop.f32.mrb[1].mxu1 }
 0x1fc   :  { %v200_v16 = vpop.f32.mrb[2].mxu1 }
 0x1fd   :  { %v201_v17 = vadd.f32 %v361_v12, %v200_v16  ;;  %v389_v18 = vpop.f32.mrb[3].mxu1  ;;  %v204_v19 = vmax.f32 %v198_v14, 0.0 }
 0x1ff   :  { %v205_v20 = vmax.f32 %v201_v17, 0.0 }
 0x201   :  { %v206_v21 = vpack.c.bf16 %v205_v20, %v204_v19 }
 0x203   :  { %395 = vmatmul.mubr.msk.bf16.vlgmr.msra.gmra.mrb[4].mxu0 %vm223_vm4, %v206_v21 }
 0x2d6   :  { %v261_v22 = vpop.f32.mrb[4].mxu0 }
 0x2d7   :  { %v396_v23 = vpop.f32.mrb[5].mxu0 }
 0x2d8   :  { %v264_v24 = vpop.f32.mrb[6].mxu0 }
 0x2d9   :  { %v268_v25 = vpack.c.bf16 %v264_v24, %v261_v22  ;;  %v397_v26 = vpop.f32.mrb[7].mxu0 }
 0x2db   :  { %399 = vmatpush3.bf16.msra.mxu1 %v268_v25 }
 0x2de   :  { %401 = vmatmul.mubr.msk.bf16.vlgmr.msra.gmra.mrb[4].mxu1 %vm95_vm1, %v416_v2 }
 0x3b1   :  { %v310_v28 = vpop.f32.mrb[4].mxu1 }
 0x3b2   :  { %v311_v29 = vadd.f32 %v367_v27, %v310_v28  ;;  %v402_v30 = vpop.f32.mrb[5].mxu1 }
 0x3b3   :  { %v313_v31 = vpop.f32.mrb[6].mxu1 }
 0x3b4   :  { %317 = vmax.xlane.f32.xlu0 %v311_v29  ;;  %v403_v32 = vpop.f32.mrb[7].mxu1  ;;  %v314_v33 = vadd.f32 %v367_v27, %v313_v31 }
 0x3b8   :  { %319 = vmax.xlane.f32.xlu0 %v314_v33 }
 0x441   :  { %v318_v34 = vpop.xlane.xlu0 %317 }
 0x442   :  { %v321_v35 = vsub.f32 %v311_v29, %v318_v34 }
 0x444   :  { %v323_v36 = vmul.f32 1.442695, %v321_v35 }
 0x445   :  { %v320_v37 = vpop.xlane.xlu0 %319 }
 0x446   :  { %v322_v38 = vsub.f32 %v314_v33, %v320_v37  ;;  %420 = vpow2.f32 %v323_v36 }
 0x448   :  { %v325_v39 = vmul.f32 1.442695, %v322_v38 }
 0x44a   :  { %422 = vpow2.f32 %v325_v39 }
 0x450   :  { %v421_v40 = vpop.eup %420 }
 0x451   :  { %327 = vadd.xlane.f32.xlu1 %v421_v40 }
 0x454   :  { %v423_v41 = vpop.eup %422 }
 0x455   :  { %329 = vadd.xlane.f32.xlu1 %v423_v41 }
 0x4de   :  { %v328_v42 = vpop.xlane.xlu1 %327 }
 0x4df   :  { %424 = vlog2.f32 %v328_v42 }
 0x4e2   :  { %v330_v43 = vpop.xlane.xlu1 %329 }
 0x4e3   :  { %426 = vlog2.f32 %v330_v43 }
 0x4e9   :  { %v425_v44 = vpop.eup %424 }
 0x4ea   :  { %v332_v45 = vmul.f32 0.6931472, %v425_v44 }
 0x4ec   :  { %v335_v46 = vsub.f32 %v321_v35, %v332_v45 }
 0x4ed   :  { %v427_v47 = vpop.eup %426 }
 0x4ee   :  { %337 = vst [vmem:[#allocation10] sm:$0xff] %v335_v46  ;;  %v334_v48 = vmul.f32 0.6931472, %v427_v47 }
 0x4f0   :  { %v336_v49 = vsub.f32 %v322_v38, %v334_v48 }
 0x4f2   :  { %338 = vst [vmem:[#allocation10 + $0x8] sm:$0xff] %v336_v49 }
 0x4f3   :  { %527 = shalt.err (!%p524_p8)
}
 0x4f4   :  { %s528_s26 = scalar_lea.hbm %s696_s6, 256 }
 0x4f5   :  { %p529_p9 = scmp.ne.s32.totalorder %s696_s6, %s528_s26  ;;  %p532_p10 = scmp.lt.u32.totalorder %s528_s26, %s696_s6 }
 0x4f7   :  { %p534_p11 = pnand %p532_p10, %p529_p9 }
 0x4f9   :  { %537 = shalt.err (!%p534_p11)
}
 0x4fa   :  { %s555_s7 = smov 128   ;;  %s556_s8 = smov 8  }
 0x4fb   :  { %350 = dma.vmem_to_hbm [thread:$0]  %s345_s21, 256, %s696_s6, [#allocation4], %s555_s7, %s555_s7, %s556_s8  }
 0x4fc   :  { %544 = dma.done.wait [#allocation4], 256  }
 0x4fd   :  { %545 = vsyncadd [#allocation4], 4294967040 }
 0x4fe   :  { %354 = vsyncpa [#allocation3], 1 }
 0x4ff   :  { %355 = vsyncpa [#allocation6], 1 }
 0x500   :  { %356 = vsyncpa [#allocation9], 1 }
 0x501   :  { %357 = vsyncpa [#allocation4], 1 }

</bundles_post_ra>
